<compile_context>
chip_gen: v6e
topology: v6e:2x2x1
jax: 0.10.0
libtpu: 0.0.40
codegen_flags: <defaults>
</compile_context>

<pallas_src>
import functools

import jax
import jax.numpy as jnp
from jax.experimental import pallas as pl
from jax.experimental.pallas import tpu as pltpu


def _attention_kernel(feat_ref, preh_ref, w1f_ref, w2_ref, ctx_ref, scores_ref,
                      *, lane_dense_out):
    # Per-step tile: feat_ref (TB, N, E), preh_ref (TB, 1, HID),
    #                w1f_ref (E, HID),    w2_ref  (1, 1, HID).
    TB, N, E = feat_ref.shape
    HID = w1f_ref.shape[1]

    f3 = feat_ref[...]                                      # (TB, N, E) matmul dtype

    # Single tall MXU pass for the feature half of W1: (TB*N, E) @ (E, HID).
    # With N a multiple of 8 (N=16 here) the flatten / unflatten only regroup
    # whole sublane tiles, so they are layout no-ops.
    # TODO(synk): for a spatial map whose N is not a multiple of 8 (e.g. 7x7),
    # pad N up to a multiple of 8 in the wrapper to keep these reshapes free.
    pre_f = jnp.dot(f3.reshape(TB * N, E), w1f_ref[...],
                    preferred_element_type=jnp.float32)     # (TB*N, HID) f32

    # Hidden half (hidden @ W1h + b1) arrives precomputed; tanh/softmax math is
    # f32 on every generation (v5e has no bf16 VPU/EUP).
    a = jnp.tanh(pre_f.reshape(TB, N, HID) + preh_ref[...])       # (TB, N, HID)

    # Second linear -> energies.  b2 dropped (softmax is shift-invariant); the
    # lane reduce over HID keeps the result in keepdims (TB, N, 1) form.
    e = jnp.sum(a * w2_ref[...], axis=-1, keepdims=True)          # (TB, N, 1) f32

    # Softmax over the spatial axis (axis=1).  The same `s` feeds the stored
    # scores and the context vector, so they stay mutually consistent (the
    # approx reciprocal leaves ~1e-3 of exact normalization on the table; swap
    # in an exact divide if callers need scores summing to exactly 1).
    m = jnp.max(e, axis=1, keepdims=True)                         # (TB, 1, 1)
    p = jnp.exp(e - m)
    s = p * pl.reciprocal(jnp.sum(p, axis=1, keepdims=True), approx=True)

    # Context vector on the VPU/XLU path: broadcast multiply + sublane reduce.
    # Avoids TB independent M=1 matmuls (full MXU push + sequential MRF pop per
    # batch row on v5e/v6e); VALU/XLU slots have plenty of slack at these
    # shapes.  On v7x (MRB) a batched jnp.einsum("bmn,bne->bme") is worth an A/B.
    ctx = jnp.sum(s * f3.astype(jnp.float32), axis=1, keepdims=True)  # (TB, 1, E)

    if lane_dense_out:
        # One full-width slab per step instead of masked 32-/16-/1-lane rows.
        ctx_ref[...] = ctx.reshape(1, 1, TB * E).astype(ctx_ref.dtype)
        scores_ref[...] = s.reshape(1, 1, TB * N).astype(scores_ref.dtype)
    else:
        ctx_ref[...] = ctx.astype(ctx_ref.dtype)                  # (TB, 1, E)
        scores_ref[...] = s.astype(scores_ref.dtype)              # (TB, N, 1)


def _vmem_capacity_bytes():
    """Per-generation VMEM capacity (v5e/v6e: 128 MiB, v7x: 64 MiB per core)."""
    try:
        return int(pltpu.get_tpu_info().vmem_capacity_bytes)
    except Exception:
        return 64 * 1024 * 1024   # v7x floor -> budget is safe on every generation


def visual_attention(features, hidden_state, params, *, tb=None,
                     matmul_dtype=jnp.float32, lane_dense_out=True):
    """features: (B, E, H, W); hidden_state: (B, HID); params: w1/b1/w2[/b2].

    matmul_dtype=jnp.bfloat16 halves the feature-stream HBM bytes and is valid
    on every TPU generation (v5e's MXU takes bf16 natively; its missing bf16
    VPU/EUP is irrelevant because all elementwise math here stays f32).
    """
    B, E, H, W = features.shape
    HID = hidden_state.shape[1]
    N = H * W

    # torch .view(batch, -1, embed_size) on a contiguous NCHW tensor is a plain
    # row-major reshape (it interleaves channel and spatial axes; that is what
    # the reference module does, so it is reproduced exactly).
    features_flat = features.reshape(B, N, E)

    # PyTorch Linear keeps weight as (out, in) and computes x @ W^T + b:
    #   cat([f, h]) @ W1^T + b1 == f @ W1f + (h @ W1h + b1)
    # The hidden half is precomputed here (batch-small, weight-heavy) and passed
    # as a (B, 1, HID) operand: removes the W1h/b1 VMEM buffers and one
    # under-filled M=tb MXU pass per step; DMA bytes match hidden_state itself.
    w1, b1, w2 = params["w1"], params["b1"], params["w2"]
    w1f = jnp.transpose(w1[:, :E]).astype(matmul_dtype)               # (E, HID)
    pre_h = (hidden_state.astype(jnp.float32)
             @ jnp.transpose(w1[:, E:]).astype(jnp.float32)
             + b1.astype(jnp.float32)[None, :])[:, None, :]           # (B, 1, HID)
    w2r = w2.reshape(1, 1, HID).astype(jnp.float32)                   # (1, 1, HID)
    # b2 is intentionally not passed: a scalar shift before softmax is a no-op.

    if tb is None:
        # Large batch tiles amortize the ~0.35 us per-step overhead and keep the
        # (tb*N, E) matmul M-dim >= 128; capped at 128 and chosen so large
        # batches still produce >= 2 grid steps (lets dimension_semantics=
        # ("parallel",) shard tiles across v7x's two TensorCores).  Sweep
        # 64/128/256 for production batch sizes.
        tb = max(8, min(128, pl.next_power_of_2(max(1, B // 2))))

    # Pad batch to a multiple of tb.  Padded rows see zero features/pre_h, give
    # a uniform softmax over zero energies (no NaN) and are sliced off below.
    B_pad = pl.cdiv(B, tb) * tb
    if B_pad != B:
        features_flat = jnp.pad(features_flat, ((0, B_pad - B), (0, 0), (0, 0)))
        pre_h = jnp.pad(pre_h, ((0, B_pad - B), (0, 0), (0, 0)))
    features_flat = features_flat.astype(matmul_dtype)
    n_steps = B_pad // tb

    # Scoped-VMEM budget from the actual block bytes, capped at 75% of this
    # generation's capacity (v7x: 64 MiB, so tiles tuned on v5e/v6e's 128 MiB
    # must shrink there).
    msize = jnp.dtype(matmul_dtype).itemsize
    block_bytes = (
        2 * tb * N * E * msize      # features (double-buffered)
        + 2 * tb * HID * 4          # pre_h    (double-buffered)
        + 2 * E * HID * msize       # W1f (constant index: DMA'd once, 2 bufs allocated)
        + 2 * HID * 4               # w2
        + 2 * tb * (E + N) * 4      # both outputs (double-buffered)
    )
    vmem_limit = int(min(max(4 * block_bytes, 32 * 1024 * 1024),
                         0.75 * _vmem_capacity_bytes()))

    in_specs = [
        pl.BlockSpec((tb, N, E), lambda b: (b, 0, 0)),       # features
        pl.BlockSpec((tb, 1, HID), lambda b: (b, 0, 0)),     # pre_h
        # Constant-index weight operands are only DMA'd once; with realistic
        # E/HID after a resnet backbone, mark them pipeline_mode=pl.Buffered(1)
        # to drop the dead second buffer (negligible at E=HID=32).
        pl.BlockSpec((E, HID), lambda b: (0, 0)),            # W1f
        pl.BlockSpec((1, 1, HID), lambda b: (0, 0, 0)),      # w2 row
    ]
    if lane_dense_out:
        out_shape = (jax.ShapeDtypeStruct((n_steps, 1, tb * E), jnp.float32),
                     jax.ShapeDtypeStruct((n_steps, 1, tb * N), jnp.float32))
        out_specs = [pl.BlockSpec((1, 1, tb * E), lambda b: (b, 0, 0)),
                     pl.BlockSpec((1, 1, tb * N), lambda b: (b, 0, 0))]
    else:
        out_shape = (jax.ShapeDtypeStruct((B_pad, 1, E), jnp.float32),
                     jax.ShapeDtypeStruct((B_pad, N, 1), jnp.float32))
        out_specs = [pl.BlockSpec((tb, 1, E), lambda b: (b, 0, 0)),
                     pl.BlockSpec((tb, N, 1), lambda b: (b, 0, 0))]

    grid_spec = pltpu.PrefetchScalarGridSpec(
        num_scalar_prefetch=0,
        grid=(n_steps,),
        in_specs=in_specs,
        out_specs=out_specs,
    )

    context, scores = pl.pallas_call(
        functools.partial(_attention_kernel, lane_dense_out=lane_dense_out),
        out_shape=out_shape,
        grid_spec=grid_spec,
        compiler_params=pltpu.CompilerParams(
            dimension_semantics=("parallel",),
            vmem_limit_bytes=vmem_limit),
    )(features_flat, pre_h, w1f, w2r)

    # Un-pad and restore the module's (B, E) / (B, N, 1) output shapes with
    # cheap XLA reshapes in the wrapper (keeps the kernel stores block-shaped).
    context = context.reshape(B_pad, E)[:B]
    if lane_dense_out:
        scores = scores.reshape(B_pad, N)[:, :, None]
    scores = scores[:B]
    return context, scores


def _reference(features, hidden_state, params):
    B, E, H, W = features.shape
    N = H * W
    f = features.reshape(B, N, E)
    h = jnp.broadcast_to(hidden_state[:, None, :], (B, N, hidden_state.shape[1]))
    x = jnp.concatenate([f, h], axis=2)
    a = jnp.tanh(jnp.einsum("bni,oi->bno", x, params["w1"]) + params["b1"])
    e = jnp.einsum("bnh,oh->bno", a, params["w2"]) + params["b2"]
    s = jax.nn.softmax(e, axis=1)
    ctx = jnp.sum(s * f, axis=1)
    return ctx, s


def _run(features, hidden_state, params, **kw):
    """Try the lane-dense-output variant first, fall back to plain block stores."""
    try:
        out = visual_attention(features, hidden_state, params,
                               lane_dense_out=True, **kw)
        jax.block_until_ready(out)
        return out
    except Exception:
        # TODO(synk): some Mosaic versions reject the sublane->lane collapse used
        # for the lane-dense output slabs; the fallback keeps every store in its
        # natural block shape.
        out = visual_attention(features, hidden_state, params,
                               lane_dense_out=False, **kw)
        jax.block_until_ready(out)
        return out


if __name__ == "__main__":
    # Small shapes consistent with the module's forward semantics.
    B, E, H, W = 2, 32, 4, 4          # embed_size = 32, feature map 4x4
    HID = 32                          # hidden_size = 32
    N = H * W

    key = jax.random.PRNGKey(0)
    k_feat, k_hid, k_w1, k_b1, k_w2, k_b2 = jax.random.split(key, 6)

    features = jax.random.normal(k_feat, (B, E, H, W), dtype=jnp.float32)
    hidden_state = jax.random.normal(k_hid, (B, HID), dtype=jnp.float32)

    params = {
        "w1": 0.1 * jax.random.normal(k_w1, (HID, HID + E), dtype=jnp.float32),
        "b1": 0.1 * jax.random.normal(k_b1, (HID,), dtype=jnp.float32),
        "w2": 0.1 * jax.random.normal(k_w2, (1, HID), dtype=jnp.float32),
        "b2": 0.1 * jax.random.normal(k_b2, (1,), dtype=jnp.float32),
    }

    ctx_ref, scores_ref = _reference(features, hidden_state, params)

    # f32 MXU path.
    ctx, scores = _run(features, hidden_state, params)
    assert ctx.shape == (B, E) and scores.shape == (B, N, 1)
    assert jnp.allclose(ctx, ctx_ref, atol=5e-3, rtol=5e-3)
    assert jnp.allclose(scores, scores_ref, atol=5e-3, rtol=5e-3)

    # bf16 MXU fast path (valid on v5e/v6e/v7x; f32 accumulation + f32 softmax).
    ctx_bf, scores_bf = _run(features, hidden_state, params,
                             matmul_dtype=jnp.bfloat16)
    assert jnp.allclose(ctx_bf, ctx_ref, atol=3e-2, rtol=3e-2)
    assert jnp.allclose(scores_bf, scores_ref, atol=3e-2, rtol=3e-2)

    print("KERNEL_OK")
</pallas_src>

<mosaic_0001>
module attributes {stable_mosaic.version = 11 : i64} {
  func.func @_attention_kernel(%arg0: i32, %arg1: memref<8x16x32xf32, #tpu.memory_space<vmem>>, %arg2: memref<8x1x32xf32, #tpu.memory_space<vmem>>, %arg3: memref<32x32xf32, #tpu.memory_space<vmem>>, %arg4: memref<1x1x32xf32, #tpu.memory_space<vmem>>, %arg5: memref<1x1x256xf32, #tpu.memory_space<vmem>>, %arg6: memref<1x1x128xf32, #tpu.memory_space<vmem>>) attributes {dimension_semantics = [#tpu.dimension_semantics<parallel>], iteration_bounds = array<i64: 1>, scalar_prefetch = 0 : i64, scratch_operands = 0 : i64, tpu.core_type = #tpu.core_type<tc>, window_params = [{transform_indices = @transform_0, window_bounds = array<i64: 8, 16, 32>}, {transform_indices = @transform_1, window_bounds = array<i64: 8, 1, 32>}, {pipeline_mode = #tpu.pipeline_mode<synchronous>, transform_indices = @transform_2, window_bounds = array<i64: 32, 32>}, {pipeline_mode = #tpu.pipeline_mode<synchronous>, transform_indices = @transform_3, window_bounds = array<i64: 1, 1, 32>}, {transform_indices = @transform_4, window_bounds = array<i64: 1, 1, 256>}, {transform_indices = @transform_5, window_bounds = array<i64: 1, 1, 128>}]} {
    %c0 = arith.constant 0 : index
    %c0_0 = arith.constant 0 : index
    %c0_1 = arith.constant 0 : index
    %0 = vector.load %arg1[%c0, %c0_0, %c0_1] : memref<8x16x32xf32, #tpu.memory_space<vmem>>, vector<8x16x32xf32>
    %1 = vector.shape_cast %0 : vector<8x16x32xf32> to vector<128x32xf32>
    %c0_2 = arith.constant 0 : index
    %c0_3 = arith.constant 0 : index
    %2 = vector.load %arg3[%c0_2, %c0_3] : memref<32x32xf32, #tpu.memory_space<vmem>>, vector<32x32xf32>
    %cst = arith.constant dense<0.000000e+00> : vector<128x32xf32>
    %3 = tpu.matmul %1, %2, %cst {dimension_numbers = #tpu.dot_dimension_numbers<[1], [0], [0], [1], [0, 0, 1, 1], [], []>} : vector<128x32xf32>, vector<32x32xf32>, vector<128x32xf32> -> vector<128x32xf32>
    %4 = vector.shape_cast %3 : vector<128x32xf32> to vector<8x16x32xf32>
    %c0_4 = arith.constant 0 : index
    %c0_5 = arith.constant 0 : index
    %c0_6 = arith.constant 0 : index
    %5 = vector.load %arg2[%c0_4, %c0_5, %c0_6] : memref<8x1x32xf32, #tpu.memory_space<vmem>>, vector<8x1x32xf32>
    %6 = vector.broadcast %5 : vector<8x1x32xf32> to vector<8x16x32xf32>
    %7 = arith.addf %4, %6 : vector<8x16x32xf32>
    %8 = math.tanh %7 : vector<8x16x32xf32>
    %c0_7 = arith.constant 0 : index
    %c0_8 = arith.constant 0 : index
    %c0_9 = arith.constant 0 : index
    %9 = vector.load %arg4[%c0_7, %c0_8, %c0_9] : memref<1x1x32xf32, #tpu.memory_space<vmem>>, vector<1x1x32xf32>
    %10 = vector.broadcast %9 : vector<1x1x32xf32> to vector<8x16x32xf32>
    %11 = arith.mulf %8, %10 : vector<8x16x32xf32>
    %cst_10 = arith.constant dense<0.000000e+00> : vector<8x16xf32>
    %12 = vector.multi_reduction <add>, %11, %cst_10 [2] : vector<8x16x32xf32> to vector<8x16xf32>
    %13 = vector.shape_cast %12 : vector<8x16xf32> to vector<8x16x1xf32>
    %cst_11 = arith.constant dense<0xFF800000> : vector<8x1xf32>
    %14 = vector.multi_reduction <maximumf>, %13, %cst_11 [1] : vector<8x16x1xf32> to vector<8x1xf32>
    %15 = vector.shape_cast %14 : vector<8x1xf32> to vector<8x1x1xf32>
    %16 = vector.broadcast %15 : vector<8x1x1xf32> to vector<8x16x1xf32>
    %17 = arith.subf %13, %16 : vector<8x16x1xf32>
    %18 = math.exp %17 : vector<8x16x1xf32>
    %cst_12 = arith.constant dense<0.000000e+00> : vector<8x1xf32>
    %19 = vector.multi_reduction <add>, %18, %cst_12 [1] : vector<8x16x1xf32> to vector<8x1xf32>
    %20 = vector.shape_cast %19 : vector<8x1xf32> to vector<8x1x1xf32>
    %21 = tpu.reciprocal %20 {approx = true} : vector<8x1x1xf32> -> vector<8x1x1xf32>
    %22 = vector.broadcast %21 : vector<8x1x1xf32> to vector<8x16x1xf32>
    %23 = arith.mulf %18, %22 : vector<8x16x1xf32>
    %24 = vector.broadcast %23 : vector<8x16x1xf32> to vector<8x16x32xf32>
    %25 = arith.mulf %24, %0 : vector<8x16x32xf32>
    %cst_13 = arith.constant dense<0.000000e+00> : vector<8x32xf32>
    %26 = vector.multi_reduction <add>, %25, %cst_13 [1] : vector<8x16x32xf32> to vector<8x32xf32>
    %27 = vector.shape_cast %26 : vector<8x32xf32> to vector<8x1x32xf32>
    %28 = vector.shape_cast %27 : vector<8x1x32xf32> to vector<1x1x256xf32>
    %c0_14 = arith.constant 0 : index
    %c0_15 = arith.constant 0 : index
    %c0_16 = arith.constant 0 : index
    %29 = vector.load %arg5[%c0_14, %c0_15, %c0_16] : memref<1x1x256xf32, #tpu.memory_space<vmem>>, vector<1x1x256xf32>
    tpu.vector_store %arg5[%c0_14, %c0_15, %c0_16], %28 {strides = array<i32>} : memref<1x1x256xf32, #tpu.memory_space<vmem>>, vector<1x1x256xf32>,
    %30 = vector.shape_cast %23 : vector<8x16x1xf32> to vector<1x1x128xf32>
    %c0_17 = arith.constant 0 : index
    %c0_18 = arith.constant 0 : index
    %c0_19 = arith.constant 0 : index
    %31 = vector.load %arg6[%c0_17, %c0_18, %c0_19] : memref<1x1x128xf32, #tpu.memory_space<vmem>>, vector<1x1x128xf32>
    tpu.vector_store %arg6[%c0_17, %c0_18, %c0_19], %30 {strides = array<i32>} : memref<1x1x128xf32, #tpu.memory_space<vmem>>, vector<1x1x128xf32>,
    return
  }
  func.func @transform_0(%arg0: i32) -> (i32, i32, i32) {
    %c0_i32 = arith.constant 0 : i32
    %c0_i32_0 = arith.constant 0 : i32
    %c0_i32_1 = arith.constant 0 : i32
    return %arg0, %c0_i32, %c0_i32_0 : i32, i32, i32
  }
  func.func @transform_1(%arg0: i32) -> (i32, i32, i32) {
    %c0_i32 = arith.constant 0 : i32
    %c0_i32_0 = arith.constant 0 : i32
    %c0_i32_1 = arith.constant 0 : i32
    return %arg0, %c0_i32, %c0_i32_0 : i32, i32, i32
  }
  func.func @transform_2(%arg0: i32) -> (i32, i32) {
    %c0_i32 = arith.constant 0 : i32
    %c0_i32_0 = arith.constant 0 : i32
    %c0_i32_1 = arith.constant 0 : i32
    return %c0_i32, %c0_i32_0 : i32, i32
  }
  func.func @transform_3(%arg0: i32) -> (i32, i32, i32) {
    %c0_i32 = arith.constant 0 : i32
    %c0_i32_0 = arith.constant 0 : i32
    %c0_i32_1 = arith.constant 0 : i32
    %c0_i32_2 = arith.constant 0 : i32
    return %c0_i32, %c0_i32_0, %c0_i32_1 : i32, i32, i32
  }
  func.func @transform_4(%arg0: i32) -> (i32, i32, i32) {
    %c0_i32 = arith.constant 0 : i32
    %c0_i32_0 = arith.constant 0 : i32
    %c0_i32_1 = arith.constant 0 : i32
    return %arg0, %c0_i32, %c0_i32_0 : i32, i32, i32
  }
  func.func @transform_5(%arg0: i32) -> (i32, i32, i32) {
    %c0_i32 = arith.constant 0 : i32
    %c0_i32_0 = arith.constant 0 : i32
    %c0_i32_1 = arith.constant 0 : i32
    return %arg0, %c0_i32, %c0_i32_0 : i32, i32, i32
  }
}

module attributes {stable_mosaic.version = 11 : i64} {
  func.func @_attention_kernel(%arg0: i32, %arg1: memref<8x16x32xf32, #tpu.memory_space<vmem>>, %arg2: memref<8x1x32xf32, #tpu.memory_space<vmem>>, %arg3: memref<32x32xf32, #tpu.memory_space<vmem>>, %arg4: memref<1x1x32xf32, #tpu.memory_space<vmem>>, %arg5: memref<8x1x32xf32, #tpu.memory_space<vmem>>, %arg6: memref<8x16x1xf32, #tpu.memory_space<vmem>>) attributes {dimension_semantics = [#tpu.dimension_semantics<parallel>], iteration_bounds = array<i64: 1>, scalar_prefetch = 0 : i64, scratch_operands = 0 : i64, tpu.core_type = #tpu.core_type<tc>, window_params = [{transform_indices = @transform_0, window_bounds = array<i64: 8, 16, 32>}, {transform_indices = @transform_1, window_bounds = array<i64: 8, 1, 32>}, {pipeline_mode = #tpu.pipeline_mode<synchronous>, transform_indices = @transform_2, window_bounds = array<i64: 32, 32>}, {pipeline_mode = #tpu.pipeline_mode<synchronous>, transform_indices = @transform_3, window_bounds = array<i64: 1, 1, 32>}, {transform_indices = @transform_4, window_bounds = array<i64: 8, 1, 32>}, {transform_indices = @transform_5, window_bounds = array<i64: 8, 16, 1>}]} {
    %c0 = arith.constant 0 : index
    %c0_0 = arith.constant 0 : index
    %c0_1 = arith.constant 0 : index
    %0 = vector.load %arg1[%c0, %c0_0, %c0_1] : memref<8x16x32xf32, #tpu.memory_space<vmem>>, vector<8x16x32xf32>
    %1 = vector.shape_cast %0 : vector<8x16x32xf32> to vector<128x32xf32>
    %c0_2 = arith.constant 0 : index
    %c0_3 = arith.constant 0 : index
    %2 = vector.load %arg3[%c0_2, %c0_3] : memref<32x32xf32, #tpu.memory_space<vmem>>, vector<32x32xf32>
    %cst = arith.constant dense<0.000000e+00> : vector<128x32xf32>
    %3 = tpu.matmul %1, %2, %cst {dimension_numbers = #tpu.dot_dimension_numbers<[1], [0], [0], [1], [0, 0, 1, 1], [], []>} : vector<128x32xf32>, vector<32x32xf32>, vector<128x32xf32> -> vector<128x32xf32>
    %4 = vector.shape_cast %3 : vector<128x32xf32> to vector<8x16x32xf32>
    %c0_4 = arith.constant 0 : index
    %c0_5 = arith.constant 0 : index
    %c0_6 = arith.constant 0 : index
    %5 = vector.load %arg2[%c0_4, %c0_5, %c0_6] : memref<8x1x32xf32, #tpu.memory_space<vmem>>, vector<8x1x32xf32>
    %6 = vector.broadcast %5 : vector<8x1x32xf32> to vector<8x16x32xf32>
    %7 = arith.addf %4, %6 : vector<8x16x32xf32>
    %8 = math.tanh %7 : vector<8x16x32xf32>
    %c0_7 = arith.constant 0 : index
    %c0_8 = arith.constant 0 : index
    %c0_9 = arith.constant 0 : index
    %9 = vector.load %arg4[%c0_7, %c0_8, %c0_9] : memref<1x1x32xf32, #tpu.memory_space<vmem>>, vector<1x1x32xf32>
    %10 = vector.broadcast %9 : vector<1x1x32xf32> to vector<8x16x32xf32>
    %11 = arith.mulf %8, %10 : vector<8x16x32xf32>
    %cst_10 = arith.constant dense<0.000000e+00> : vector<8x16xf32>
    %12 = vector.multi_reduction <add>, %11, %cst_10 [2] : vector<8x16x32xf32> to vector<8x16xf32>
    %13 = vector.shape_cast %12 : vector<8x16xf32> to vector<8x16x1xf32>
    %cst_11 = arith.constant dense<0xFF800000> : vector<8x1xf32>
    %14 = vector.multi_reduction <maximumf>, %13, %cst_11 [1] : vector<8x16x1xf32> to vector<8x1xf32>
    %15 = vector.shape_cast %14 : vector<8x1xf32> to vector<8x1x1xf32>
    %16 = vector.broadcast %15 : vector<8x1x1xf32> to vector<8x16x1xf32>
    %17 = arith.subf %13, %16 : vector<8x16x1xf32>
    %18 = math.exp %17 : vector<8x16x1xf32>
    %cst_12 = arith.constant dense<0.000000e+00> : vector<8x1xf32>
    %19 = vector.multi_reduction <add>, %18, %cst_12 [1] : vector<8x16x1xf32> to vector<8x1xf32>
    %20 = vector.shape_cast %19 : vector<8x1xf32> to vector<8x1x1xf32>
    %21 = tpu.reciprocal %20 {approx = true} : vector<8x1x1xf32> -> vector<8x1x1xf32>
    %22 = vector.broadcast %21 : vector<8x1x1xf32> to vector<8x16x1xf32>
    %23 = arith.mulf %18, %22 : vector<8x16x1xf32>
    %24 = vector.broadcast %23 : vector<8x16x1xf32> to vector<8x16x32xf32>
    %25 = arith.mulf %24, %0 : vector<8x16x32xf32>
    %cst_13 = arith.constant dense<0.000000e+00> : vector<8x32xf32>
    %26 = vector.multi_reduction <add>, %25, %cst_13 [1] : vector<8x16x32xf32> to vector<8x32xf32>
    %27 = vector.shape_cast %26 : vector<8x32xf32> to vector<8x1x32xf32>
    %c0_14 = arith.constant 0 : index
    %c0_15 = arith.constant 0 : index
    %c0_16 = arith.constant 0 : index
    %28 = vector.load %arg5[%c0_14, %c0_15, %c0_16] : memref<8x1x32xf32, #tpu.memory_space<vmem>>, vector<8x1x32xf32>
    tpu.vector_store %arg5[%c0_14, %c0_15, %c0_16], %27 {strides = array<i32>} : memref<8x1x32xf32, #tpu.memory_space<vmem>>, vector<8x1x32xf32>,
    %c0_17 = arith.constant 0 : index
    %c0_18 = arith.constant 0 : index
    %c0_19 = arith.constant 0 : index
    %29 = vector.load %arg6[%c0_17, %c0_18, %c0_19] : memref<8x16x1xf32, #tpu.memory_space<vmem>>, vector<8x16x1xf32>
    tpu.vector_store %arg6[%c0_17, %c0_18, %c0_19], %23 {strides = array<i32>} : memref<8x16x1xf32, #tpu.memory_space<vmem>>, vector<8x16x1xf32>,
    return
  }
  func.func @transform_0(%arg0: i32) -> (i32, i32, i32) {
    %c0_i32 = arith.constant 0 : i32
    %c0_i32_0 = arith.constant 0 : i32
    %c0_i32_1 = arith.constant 0 : i32
    return %arg0, %c0_i32, %c0_i32_0 : i32, i32, i32
  }
  func.func @transform_1(%arg0: i32) -> (i32, i32, i32) {
    %c0_i32 = arith.constant 0 : i32
    %c0_i32_0 = arith.constant 0 : i32
    %c0_i32_1 = arith.constant 0 : i32
    return %arg0, %c0_i32, %c0_i32_0 : i32, i32, i32
  }
  func.func @transform_2(%arg0: i32) -> (i32, i32) {
    %c0_i32 = arith.constant 0 : i32
    %c0_i32_0 = arith.constant 0 : i32
    %c0_i32_1 = arith.constant 0 : i32
    return %c0_i32, %c0_i32_0 : i32, i32
  }
  func.func @transform_3(%arg0: i32) -> (i32, i32, i32) {
    %c0_i32 = arith.constant 0 : i32
    %c0_i32_0 = arith.constant 0 : i32
    %c0_i32_1 = arith.constant 0 : i32
    %c0_i32_2 = arith.constant 0 : i32
    return %c0_i32, %c0_i32_0, %c0_i32_1 : i32, i32, i32
  }
  func.func @transform_4(%arg0: i32) -> (i32, i32, i32) {
    %c0_i32 = arith.constant 0 : i32
    %c0_i32_0 = arith.constant 0 : i32
    %c0_i32_1 = arith.constant 0 : i32
    return %arg0, %c0_i32, %c0_i32_0 : i32, i32, i32
  }
  func.func @transform_5(%arg0: i32) -> (i32, i32, i32) {
    %c0_i32 = arith.constant 0 : i32
    %c0_i32_0 = arith.constant 0 : i32
    %c0_i32_1 = arith.constant 0 : i32
    return %arg0, %c0_i32, %c0_i32_0 : i32, i32, i32
  }
}

</mosaic_0001>

<bundles_post_ra>
// kernel: tpu_custom_call.1
= control target key start
LH: loop header
LB: loop body
LE: loop exit
PB: predicated region body
PF: predicated region fallthrough
CT: control target
= control target key end

     0   :  { %11 = vsyncpa [#allocation3], 0  ;;  %s1370_s0 = inlined_call_operand.hbm [shape: f32[8,16,32], index: 0, kind: input, shape index: {}]   ;;  %s1371_s1 = inlined_call_operand.hbm [shape: f32[8,1,32], index: 1, kind: input, shape index: {}]   ;;  %s1372_s2 = inlined_call_operand.hbm [shape: f32[32,32], index: 2, kind: input, shape index: {}]   ;;  %s1373_s3 = inlined_call_operand.vmem [shape: f32[1,1,32], index: 3, kind: input, shape index: {}]   ;;  %s1374_s4 = inlined_call_operand.hbm [shape: f32[8,1,32], index: 4, kind: output, shape index: {0}]   ;;  %s1375_s5 = inlined_call_operand.vmem [shape: f32[8,16,1], index: 5, kind: output, shape index: {1}]  }
   0x1   :  { %12 = vsyncpa [#allocation6], 0 }
   0x2   :  { %13 = vsyncpa [#allocation4], 0  ;;  %s1013_s18 = smov [#allocation5]  }
   0x3   :  { %s31_s19 = sshll.u32 %s1013_s18, 4  ;;  %s32_s19 = int_to_ptr.vmem [resolvable:$true] %s31_s19 }
   0x4   :  { %s935_s20 = scalar_lea.vmem %s32_s19, 128  ;;  %p940_p1 = scmp.lt.s32.totalorder %s32_s19, %s32_s19 }
   0x5   :  { %p936_p0 = scmp.ne.s32.totalorder %s32_s19, %s935_s20  ;;  %p941_p2 = scmp.lt.s32.totalorder %s935_s20, %s935_s20 }
   0x7   :  { %p942_p3 = por %p941_p2, %p940_p1 }
   0x9   :  { %p943_p4 = pnand %p942_p3, %p936_p0 }
   0xb   :  { %946 = shalt.err (!%p943_p4)
}
   0xc   :  { %s1014_s21 = smov 16   ;;  %s1015_s22 = smov 1  }
   0xd   :  { %37 = dma.hbm_to_vmem [thread:$0]  %s1371_s1, 128, %s32_s19, [#allocation6], %s1014_s21, %s1014_s21, %s1015_s22  }
   0xe   :  { %s1016_s25 = smov [#allocation2]  }
   0xf   :  { %s19_s26 = sshll.u32 %s1016_s25, 4  ;;  %s20_s26 = int_to_ptr.vmem [resolvable:$true] %s19_s26 }
  0x10   :  { %s955_s27 = scalar_lea.vmem %s20_s26, 2048  ;;  %p960_p6 = scmp.lt.s32.totalorder %s20_s26, %s20_s26 }
  0x11   :  { %p956_p5 = scmp.ne.s32.totalorder %s20_s26, %s955_s27  ;;  %p961_p7 = scmp.lt.s32.totalorder %s955_s27, %s955_s27 }
  0x13   :  { %p962_p8 = por %p961_p7, %p960_p6 }
  0x15   :  { %p963_p9 = pnand %p962_p8, %p956_p5 }
  0x17   :  { %966 = shalt.err (!%p963_p9)
}
  0x18   :  { %s1017_s28 = smov 128   ;;  %s1018_s29 = smov 8  }
  0x19   :  { %25 = dma.hbm_to_vmem [thread:$0]  %s1370_s0, 2048, %s20_s26, [#allocation3], %s1017_s28, %s1017_s28, %s1018_s29  }
  0x1a   :  { %s1019_s7 = smov [#allocation7]  }
  0x1b   :  { %s43_s8 = sshll.u32 %s1019_s7, 4  ;;  %s44_s8 = int_to_ptr.vmem [resolvable:$true] %s43_s8 }
  0x1c   :  { %s975_s1 = scalar_lea.vmem %s44_s8, 512  ;;  %p980_p11 = scmp.lt.s32.totalorder %s44_s8, %s44_s8 }
  0x1d   :  { %p976_p10 = scmp.ne.s32.totalorder %s44_s8, %s975_s1  ;;  %p981_p12 = scmp.lt.s32.totalorder %s975_s1, %s975_s1 }
  0x1f   :  { %p982_p13 = por %p981_p12, %p980_p11 }
  0x21   :  { %p983_p0 = pnand %p982_p13, %p976_p10 }
  0x23   :  { %986 = shalt.err (!%p983_p0)
}
  0x24   :  { %49 = dma.hbm_to_vmem [thread:$0]  %s1372_s2, 512, %s44_s8, [#allocation6], %s1017_s28, %s1017_s28, %s1018_s29  }
  0x25   :  { %1007 = dma.done.wait [#allocation3], 2048  }
  0x26   :  { %1008 = vsyncadd [#allocation3], 4294965248 }
  0x27   :  { %1009 = dma.done.wait [#allocation6], 640  }
  0x28   :  { %1010 = vsyncadd [#allocation6], 4294966656  ;;  %v80_v0 = vld [vmem:[#allocation7 + $0x18] sm:$0xff]  ;;  %v79_v1 = vld [vmem:[#allocation7 + $0x10] sm:$0xff]  ;;  %vm81_vm0 = vcmask 261120   ;;  %vm715_vm1 = vcmask 7168  }
  0x29   :  { %799 = vmatprep.subr.mxu0 %v80_v0  ;;  %831 = vmatprep.subr.mxu1 %v80_v0  ;;  %v78_v2 = vld [vmem:[#allocation7 + $0x8] sm:$0xff]  ;;  %v77_v3 = vld [vmem:[#allocation7] sm:$0xff]  ;;  %v1063_v4 = vld [vmem:[#allocation2] sm:$0xff]  ;;  %vm706_vm2 = vcmask 253952  }
  0x2a   :  { %800 = vmatpush3.msra.mxu0 %v80_v0  ;;  %835 = vmatpush3.msra.mxu1 %v80_v0  ;;  %v1065_v5 = vld [vmem:[#allocation2 + $0x40] sm:$0xff]  ;;  %v1067_v6 = vld [vmem:[#allocation2 + $0x8] sm:$0xff]  ;;  %v1071_v8 = vld [vmem:[#allocation2 + $0x10] sm:$0xff] }
  0x2b   :  { %801 = vmatprep.subr.mxu0 %v79_v1  ;;  %832 = vmatprep.subr.mxu1 %v79_v1  ;;  %v1069_v7 = vld [vmem:[#allocation2 + $0x48] sm:$0xff]  ;;  %v1073_v9 = vld [vmem:[#allocation2 + $0x50] sm:$0xff]  ;;  %v1085_v10 = vld [vmem:[#allocation2 + $0x18] sm:$0xff] }
  0x2c   :  { %802 = vmatpush3.msra.mxu0 %v79_v1  ;;  %836 = vmatpush3.msra.mxu1 %v79_v1  ;;  %v1089_v11 = vld [vmem:[#allocation2 + $0x58] sm:$0xff]  ;;  %v1091_v12 = vld [vmem:[#allocation2 + $0x20] sm:$0xff]  ;;  %v1101_v14 = vld [vmem:[#allocation2 + $0x28] sm:$0xff] }
  0x2d   :  { %803 = vmatprep.subr.mxu0 %v78_v2  ;;  %833 = vmatprep.subr.mxu1 %v78_v2  ;;  %v1093_v13 = vld [vmem:[#allocation2 + $0x60] sm:$0xff]  ;;  %v1105_v15 = vld [vmem:[#allocation2 + $0x68] sm:$0xff]  ;;  %v1107_v16 = vld [vmem:[#allocation2 + $0x30] sm:$0xff] }
  0x2e   :  { %804 = vmatpush3.msra.mxu0 %v78_v2  ;;  %837 = vmatpush3.msra.mxu1 %v78_v2  ;;  %v1109_v17 = vld [vmem:[#allocation2 + $0x70] sm:$0xff]  ;;  %v1117_v18 = vld [vmem:[#allocation2 + $0x38] sm:$0xff]  ;;  %v770_v20 = vld [vmem:[#allocation5] ss:$0 sm:$0xff] }
  0x2f   :  { %805 = vmatprep.subr.mxu0 %v77_v3  ;;  %834 = vmatprep.subr.mxu1 %v77_v3  ;;  %v1121_v19 = vld [vmem:[#allocation2 + $0x78] sm:$0xff]  ;;  %v774_v21 = vld [vmem:[#allocation5 + $0x4] ss:$0 sm:$0xff]  ;;  %v771_v28 = vld [vmem:[#allocation5 + $0x1] ss:$0 sm:$0xff] }
  0x30   :  { %806 = vmatpush3.msra.mxu0 %v77_v3  ;;  %838 = vmatpush3.msra.mxu1 %v77_v3  ;;  %v775_v29 = vld [vmem:[#allocation5 + $0x5] ss:$0 sm:$0xff]  ;;  %v772_v41 = vld [vmem:[#allocation5 + $0x2] ss:$0 sm:$0xff]  ;;  %v776_v46 = vld [vmem:[#allocation5 + $0x6] ss:$0 sm:$0xff] }
  0x31   :  { %807 = vmatprep.mubr.msk.f32.mxu0 %vm81_vm0, %v1063_v4  ;;  %819 = vmatprep.mubr.msk.f32.mxu1 %vm81_vm0, %v1065_v5  ;;  %v1130_v49 = vld [vmem:[%s1373_s3] ss:$0 sm:$0xff]  ;;  %v773_v54 = vld [vmem:[#allocation5 + $0x3] ss:$0 sm:$0xff]  ;;  %v777_v63 = vld [vmem:[#allocation5 + $0x7] ss:$0 sm:$0xff] }
  0x32   :  { %808 = vmatmul.mubr.msk.f32.vlgmr.msra.gmra.mxu0 %vm81_vm0, %v1067_v6  ;;  %820 = vmatmul.mubr.msk.f32.vlgmr.msra.gmra.mxu1 %vm81_vm0, %v1069_v7 }
  0x33   :  { %810 = vmatprep.mubr.msk.f32.mxu0 %vm81_vm0, %v1071_v8  ;;  %822 = vmatprep.mubr.msk.f32.mxu1 %vm81_vm0, %v1073_v9 }
  0x36   :  { %811 = vmatmul.mubr.msk.f32.gmra.mxu0 %vm81_vm0, %v1085_v10  ;;  %823 = vmatmul.mubr.msk.f32.gmra.mxu1 %vm81_vm0, %v1089_v11 }
  0x37   :  { %813 = vmatprep.mubr.msk.f32.mxu0 %vm81_vm0, %v1091_v12  ;;  %825 = vmatprep.mubr.msk.f32.mxu1 %vm81_vm0, %v1093_v13 }
  0x3a   :  { %814 = vmatmul.mubr.msk.f32.gmra.mxu0 %vm81_vm0, %v1101_v14  ;;  %826 = vmatmul.mubr.msk.f32.gmra.mxu1 %vm81_vm0, %v1105_v15 }
  0x3b   :  { %816 = vmatprep.mubr.msk.f32.mxu0 %vm81_vm0, %v1107_v16  ;;  %828 = vmatprep.mubr.msk.f32.mxu1 %vm81_vm0, %v1109_v17 }
  0x3e   :  { %817 = vmatmul.mubr.msk.f32.gmra.mxu0 %vm81_vm0, %v1117_v18  ;;  %829 = vmatmul.mubr.msk.f32.gmra.mxu1 %vm81_vm0, %v1121_v19 }
  0xf2   :  { %v809_v22 = vpop.f32.mrf.mxu0  ;;  %v821_v23 = vpop.f32.mrf.mxu1 }
  0xf3   :  { %v332_v24 = vadd.f32 %v809_v22, %v770_v20  ;;  %v340_v25 = vadd.f32 %v821_v23, %v774_v21 }
  0xf4   :  { %v196_v26 = vpop.f32.mrf.mxu0  ;;  %v236_v27 = vpop.f32.mrf.mxu1 }
  0xf5   :  { %847 = vtanh.f32 %v332_v24  ;;  %v331_v30 = vadd.f32 %v770_v20, %v196_v26  ;;  %v339_v31 = vadd.f32 %v774_v21, %v236_v27 }
  0xf6   :  { %849 = vtanh.f32 %v340_v25  ;;  %v812_v32 = vpop.f32.mrf.mxu0  ;;  %v824_v33 = vpop.f32.mrf.mxu1 }
  0xf7   :  { %851 = vtanh.f32 %v331_v30  ;;  %v334_v34 = vadd.f32 %v812_v32, %v771_v28  ;;  %v342_v35 = vadd.f32 %v824_v33, %v775_v29 }
  0xf8   :  { %853 = vtanh.f32 %v339_v31  ;;  %v206_v36 = vpop.f32.mrf.mxu0  ;;  %v246_v37 = vpop.f32.mrf.mxu1 }
  0xf9   :  { %855 = vtanh.f32 %v334_v34  ;;  %v341_v38 = vadd.f32 %v775_v29, %v246_v37  ;;  %v333_v39 = vadd.f32 %v771_v28, %v206_v36 }
  0xfa   :  { %857 = vtanh.f32 %v342_v35  ;;  %v815_v40 = vpop.f32.mrf.mxu0  ;;  %v827_v42 = vpop.f32.mrf.mxu1 }
  0xfb   :  { %859 = vtanh.f32 %v341_v38  ;;  %v336_v45 = vadd.f32 %v815_v40, %v772_v41  ;;  %v344_v53 = vadd.f32 %v827_v42, %v776_v46 }
  0xfc   :  { %v216_v43 = vpop.f32.mrf.mxu0  ;;  %861 = vtanh.f32 %v333_v39  ;;  %v256_v47 = vpop.f32.mrf.mxu1 }
  0xfd   :  { %v335_v44 = vadd.f32 %v772_v41, %v216_v43  ;;  %v343_v50 = vadd.f32 %v776_v46, %v256_v47 }
  0xfe   :  { %v818_v48 = vpop.f32.mrf.mxu0  ;;  %v830_v51 = vpop.f32.mrf.mxu1 }
  0xff   :  { %863 = vtanh.f32 %v335_v44  ;;  %v338_v20 = vadd.f32 %v818_v48, %v773_v54  ;;  %v346_v29 = vadd.f32 %v830_v51, %v777_v63 }
 0x100   :  { %865 = vtanh.f32 %v336_v45  ;;  %v226_v55 = vpop.f32.mrf.mxu0  ;;  %v266_v1 = vpop.f32.mrf.mxu1 }
 0x101   :  { %867 = vtanh.f32 %v343_v50  ;;  %v337_v62 = vadd.f32 %v773_v54, %v226_v55  ;;  %v345_v23 = vadd.f32 %v777_v63, %v266_v1 }
 0x102   :  { %v848_v52 = vpop.eup %847  ;;  %869 = vtanh.f32 %v344_v53 }
 0x103   :  { %v850_v56 = vpop.eup %849  ;;  %v371_v57 = vmul.f32 %v848_v52, %v1130_v49  ;;  %871 = vtanh.f32 %v337_v62 }
 0x104   :  { %v852_v58 = vpop.eup %851  ;;  %v379_v59 = vmul.f32 %v850_v56, %v1130_v49  ;;  %873 = vtanh.f32 %v338_v20 }
 0x105   :  { %v854_v60 = vpop.eup %853  ;;  %v389_v61 = vsel %vm81_vm0, %v371_v57, 0.0  ;;  %v370_v0 = vmul.f32 %v852_v58, %v1130_v49  ;;  %875 = vtanh.f32 %v345_v23 }
 0x106   :  { %v856_v2 = vpop.eup %855  ;;  %v413_v3 = vsel %vm81_vm0, %v379_v59, 0.0  ;;  %390 = vadd.xlane.f32.xlu0 %v389_v61  ;;  %v378_v27 = vmul.f32 %v854_v60, %v1130_v49  ;;  %877 = vtanh.f32 %v346_v29 }
 0x107   :  { %v858_v21 = vpop.eup %857  ;;  %414 = vadd.xlane.f32.xlu1 %v413_v3  ;;  %v373_v22 = vmul.f32 %v856_v2, %v1130_v49  ;;  %v386_v25 = vsel %vm81_vm0, %v370_v0, 0.0 }
 0x108   :  { %v381_v24 = vmul.f32 %v858_v21, %v1130_v49  ;;  %v860_v28 = vpop.eup %859  ;;  %v410_v32 = vsel %vm81_vm0, %v378_v27, 0.0 }
 0x109   :  { %v395_v26 = vsel %vm81_vm0, %v373_v22, 0.0  ;;  %v862_v30 = vpop.eup %861  ;;  %v380_v33 = vmul.f32 %v860_v28, %v1130_v49 }
 0x10a   :  { %387 = vadd.xlane.f32.xlu0 %v386_v25  ;;  %v419_v31 = vsel %vm81_vm0, %v381_v24, 0.0  ;;  %v372_v35 = vmul.f32 %v862_v30, %v1130_v49 }
 0x10b   :  { %396 = vadd.xlane.f32.xlu1 %v395_v26  ;;  %v416_v37 = vsel %vm81_vm0, %v380_v33, 0.0 }
 0x10c   :  { %v864_v34 = vpop.eup %863  ;;  %v392_v40 = vsel %vm81_vm0, %v372_v35, 0.0 }
 0x10d   :  { %v866_v36 = vpop.eup %865  ;;  %v374_v38 = vmul.f32 %v864_v34, %v1130_v49 }
 0x10e   :  { %411 = vadd.xlane.f32.xlu0 %v410_v32  ;;  %v868_v39 = vpop.eup %867  ;;  %v375_v41 = vmul.f32 %v866_v36, %v1130_v49 }
 0x10f   :  { %420 = vadd.xlane.f32.xlu1 %v419_v31  ;;  %v870_v42 = vpop.eup %869  ;;  %v398_v43 = vsel %vm81_vm0, %v374_v38, 0.0  ;;  %v382_v44 = vmul.f32 %v868_v39, %v1130_v49 }
 0x110   :  { %v872_v45 = vpop.eup %871  ;;  %v401_v46 = vsel %vm81_vm0, %v375_v41, 0.0  ;;  %v383_v47 = vmul.f32 %v870_v42, %v1130_v49 }
 0x111   :  { %v874_v48 = vpop.eup %873  ;;  %v422_v50 = vsel %vm81_vm0, %v382_v44, 0.0  ;;  %v376_v51 = vmul.f32 %v872_v45, %v1130_v49 }
 0x112   :  { %417 = vadd.xlane.f32.xlu0 %v416_v37  ;;  %v876_v52 = vpop.eup %875  ;;  %v425_v53 = vsel %vm81_vm0, %v383_v47, 0.0  ;;  %v377_v54 = vmul.f32 %v874_v48, %v1130_v49 }
 0x113   :  { %393 = vadd.xlane.f32.xlu1 %v392_v40  ;;  %v878_v55 = vpop.eup %877  ;;  %v404_v56 = vsel %vm81_vm0, %v376_v51, 0.0  ;;  %v384_v57 = vmul.f32 %v876_v52, %v1130_v49 }
 0x114   :  { %v407_v58 = vsel %vm81_vm0, %v377_v54, 0.0  ;;  %v385_v59 = vmul.f32 %v878_v55, %v1130_v49 }
 0x115   :  { %v428_v60 = vsel %vm81_vm0, %v384_v57, 0.0 }
 0x116   :  { %399 = vadd.xlane.f32.xlu0 %v398_v43  ;;  %v431_v61 = vsel %vm81_vm0, %v385_v59, 0.0 }
 0x117   :  { %402 = vadd.xlane.f32.xlu1 %v401_v46 }
 0x11a   :  { %423 = vadd.xlane.f32.xlu0 %v422_v50 }
 0x11b   :  { %426 = vadd.xlane.f32.xlu1 %v425_v53 }
 0x11e   :  { %405 = vadd.xlane.f32.xlu0 %v404_v56 }
 0x11f   :  { %408 = vadd.xlane.f32.xlu1 %v407_v58 }
 0x122   :  { %429 = vadd.xlane.f32.xlu0 %v428_v60 }
 0x123   :  { %432 = vadd.xlane.f32.xlu1 %v431_v61 }
 0x18f   :  { %v391_v62 = vpop.xlane.xlu0 %390 }
 0x190   :  { %v415_v63 = vpop.xlane.xlu1 %414 }
 0x193   :  { %v388_v0 = vpop.xlane.xlu0 %387 }
 0x194   :  { %v434_v1 = vmax.f32 %v388_v0, %v391_v62  ;;  %v1164_v2 = vpop.xlane.xlu1 %396 }
 0x196   :  { %v435_v3 = vrot.slane %v434_v1, 4 }
 0x197   :  { %v412_v20 = vpop.xlane.xlu0 %411 }
 0x198   :  { %v436_v21 = vmax.f32 %v434_v1, %v435_v3  ;;  %v462_v22 = vmax.f32 %v412_v20, %v415_v63  ;;  %v421_v23 = vpop.xlane.xlu1 %420 }
 0x19a   :  { %v437_v24 = vrot.slane %v436_v21, 2  ;;  %v463_v49 = vrot.slane %v462_v22, 4 }
 0x19b   :  { %v418_v25 = vpop.xlane.xlu0 %417 }
 0x19c   :  { %v438_v26 = vmax.f32 %v436_v21, %v437_v24  ;;  %v464_v27 = vmax.f32 %v462_v22, %v463_v49  ;;  %v469_v28 = vmax.f32 %v418_v25, %v421_v23  ;;  %v394_v29 = vpop.xlane.xlu1 %393 }
 0x19d   :  { %v441_v30 = vmax.f32 %v394_v29, %v1164_v2 }
 0x19e   :  { %v439_v31 = vrot.slane %v438_v26, 1  ;;  %v465_v32 = vrot.slane %v464_v27, 2  ;;  %v470_v33 = vrot.slane %v469_v28, 4 }
 0x19f   :  { %v442_v34 = vrot.slane %v441_v30, 4  ;;  %v1167_v35 = vpop.xlane.xlu0 %399 }
 0x1a0   :  { %v440_v36 = vmax.f32 %v438_v26, %v439_v31  ;;  %v466_v37 = vmax.f32 %v464_v27, %v465_v32  ;;  %v471_v38 = vmax.f32 %v469_v28, %v470_v33  ;;  %v1169_v39 = vpop.xlane.xlu1 %402 }
 0x1a1   :  { %v443_v40 = vmax.f32 %v441_v30, %v442_v34  ;;  %v448_v41 = vmax.f32 %v1167_v35, %v1169_v39 }
 0x1a2   :  { %v490_v42 = vsub.f32 %v388_v0, %v440_v36  ;;  %v491_v43 = vsub.f32 %v391_v62, %v440_v36  ;;  %v467_v44 = vrot.slane %v466_v37, 1  ;;  %v472_v45 = vrot.slane %v471_v38, 2 }
 0x1a3   :  { %v444_v46 = vrot.slane %v443_v40, 2  ;;  %v449_v47 = vrot.slane %v448_v41, 4  ;;  %v1173_v48 = vpop.xlane.xlu0 %423 }
 0x1a4   :  { %v506_v50 = vmul.f32 1.442695, %v490_v42  ;;  %v508_v51 = vmul.f32 1.442695, %v491_v43  ;;  %v468_v52 = vmax.f32 %v466_v37, %v467_v44  ;;  %v473_v53 = vmax.f32 %v471_v38, %v472_v45  ;;  %v1175_v54 = vpop.xlane.xlu1 %426 }
 0x1a5   :  { %v445_v55 = vmax.f32 %v443_v40, %v444_v46  ;;  %v450_v56 = vmax.f32 %v448_v41, %v449_v47  ;;  %v476_v57 = vmax.f32 %v1173_v48, %v1175_v54 }
 0x1a6   :  { %879 = vpow2.f32 %v506_v50  ;;  %v498_v58 = vsub.f32 %v412_v20, %v468_v52  ;;  %v499_v59 = vsub.f32 %v415_v63, %v468_v52  ;;  %v474_v60 = vrot.slane %v473_v53, 1 }
 0x1a7   :  { %881 = vpow2.f32 %v508_v51  ;;  %v446_v61 = vrot.slane %v445_v55, 1  ;;  %v451_v62 = vrot.slane %v450_v56, 2  ;;  %v477_v0 = vrot.slane %v476_v57, 4  ;;  %v1179_v1 = vpop.xlane.xlu0 %405 }
 0x1a8   :  { %v522_v3 = vmul.f32 1.442695, %v498_v58  ;;  %v524_v21 = vmul.f32 1.442695, %v499_v59  ;;  %v475_v22 = vmax.f32 %v473_v53, %v474_v60  ;;  %v1181_v24 = vpop.xlane.xlu1 %408 }
 0x1a9   :  { %v447_v49 = vmax.f32 %v445_v55, %v446_v61  ;;  %v452_v26 = vmax.f32 %v450_v56, %v451_v62  ;;  %v478_v27 = vmax.f32 %v476_v57, %v477_v0  ;;  %v455_v28 = vmax.f32 %v1179_v1, %v1181_v24 }
 0x1aa   :  { %883 = vpow2.f32 %v522_v3  ;;  %v500_v63 = vsub.f32 %v418_v25, %v475_v22  ;;  %v501_v20 = vsub.f32 %v421_v23, %v475_v22 }
 0x1ab   :  { %885 = vpow2.f32 %v524_v21  ;;  %v492_v30 = vsub.f32 %v394_v29, %v447_v49  ;;  %v493_v31 = vsub.f32 %v1164_v2, %v447_v49  ;;  %v453_v32 = vrot.slane %v452_v26, 1  ;;  %v1186_v33 = vpop.xlane.xlu0 %429 }
 0x1ac   :  { %v526_v34 = vmul.f32 1.442695, %v500_v63  ;;  %v528_v36 = vmul.f32 1.442695, %v501_v20  ;;  %v479_v37 = vrot.slane %v478_v27, 2  ;;  %v456_v38 = vrot.slane %v455_v28, 4  ;;  %v433_v40 = vpop.xlane.xlu1 %432 }
 0x1ad   :  { %v510_v41 = vmul.f32 1.442695, %v492_v30  ;;  %v512_v42 = vmul.f32 1.442695, %v493_v31  ;;  %v454_v43 = vmax.f32 %v452_v26, %v453_v32  ;;  %v483_v44 = vmax.f32 %v1186_v33, %v433_v40 }
 0x1ae   :  { %887 = vpow2.f32 %v526_v34  ;;  %v480_v25 = vmax.f32 %v478_v27, %v479_v37  ;;  %v457_v23 = vmax.f32 %v455_v28, %v456_v38 }
 0x1af   :  { %889 = vpow2.f32 %v528_v36  ;;  %v494_v29 = vsub.f32 %v1167_v35, %v454_v43  ;;  %v495_v2 = vsub.f32 %v1169_v39, %v454_v43  ;;  %v484_v45 = vrot.slane %v483_v44, 4 }
 0x1b0   :  { %891 = vpow2.f32 %v510_v41  ;;  %v481_v46 = vrot.slane %v480_v25, 1  ;;  %v458_v47 = vrot.slane %v457_v23, 2 }
 0x1b1   :  { %893 = vpow2.f32 %v512_v42  ;;  %v514_v50 = vmul.f32 1.442695, %v494_v29  ;;  %v516_v51 = vmul.f32 1.442695, %v495_v2  ;;  %v485_v52 = vmax.f32 %v483_v44, %v484_v45 }
 0x1b2   :  { %v482_v53 = vmax.f32 %v480_v25, %v481_v46  ;;  %v459_v55 = vmax.f32 %v457_v23, %v458_v47 }
 0x1b3   :  { %v1191_v56 = vpop.eup %879  ;;  %895 = vpow2.f32 %v514_v50  ;;  %v486_v57 = vrot.slane %v485_v52, 2 }
 0x1b4   :  { %v1193_v58 = vpop.eup %881  ;;  %897 = vpow2.f32 %v516_v51  ;;  %v502_v35 = vsub.f32 %v1173_v48, %v482_v53  ;;  %v503_v39 = vsub.f32 %v1175_v54, %v482_v53  ;;  %v460_v59 = vrot.slane %v459_v55, 1 }
 0x1b5   :  { %v538_v60 = vadd.f32 %v1193_v58, %v1191_v56  ;;  %v487_v61 = vmax.f32 %v485_v52, %v486_v57 }
 0x1b6   :  { %v530_v62 = vmul.f32 1.442695, %v502_v35  ;;  %v532_v0 = vmul.f32 1.442695, %v503_v39  ;;  %v461_v3 = vmax.f32 %v459_v55, %v460_v59 }
 0x1b7   :  { %v1199_v21 = vpop.eup %883  ;;  %v539_v22 = vrot.slane %v538_v60, 4  ;;  %v488_v49 = vrot.slane %v487_v61, 1 }
 0x1b8   :  { %v1201_v26 = vpop.eup %885  ;;  %899 = vpow2.f32 %v530_v62  ;;  %v496_v27 = vsub.f32 %v1179_v1, %v461_v3  ;;  %v497_v48 = vsub.f32 %v1181_v24, %v461_v3 }
 0x1b9   :  { %v540_v54 = vadd.f32 %v539_v22, %v538_v60  ;;  %v566_v28 = vadd.f32 %v1201_v26, %v1199_v21  ;;  %901 = vpow2.f32 %v532_v0  ;;  %v489_v63 = vmax.f32 %v487_v61, %v488_v49 }
 0x1ba   :  { %v518_v20 = vmul.f32 1.442695, %v496_v27  ;;  %v520_v30 = vmul.f32 1.442695, %v497_v48 }
 0x1bb   :  { %v1207_v31 = vpop.eup %887  ;;  %v541_v32 = vrot.slane %v540_v54, 2  ;;  %v567_v34 = vrot.slane %v566_v28, 4  ;;  %v504_v36 = vsub.f32 %v1186_v33, %v489_v63  ;;  %v505_v37 = vsub.f32 %v433_v40, %v489_v63 }
 0x1bc   :  { %v1210_v38 = vpop.eup %889  ;;  %903 = vpow2.f32 %v518_v20 }
 0x1bd   :  { %v1212_v1 = vpop.eup %891  ;;  %v542_v24 = vadd.f32 %v541_v32, %v540_v54  ;;  %v568_v41 = vadd.f32 %v567_v34, %v566_v28  ;;  %v573_v42 = vadd.f32 %v1210_v38, %v1207_v31  ;;  %905 = vpow2.f32 %v520_v30 }
 0x1be   :  { %v1216_v43 = vpop.eup %893  ;;  %v534_v44 = vmul.f32 1.442695, %v504_v36  ;;  %v536_v25 = vmul.f32 1.442695, %v505_v37 }
 0x1bf   :  { %v543_v23 = vrot.slane %v542_v24, 1  ;;  %v569_v29 = vrot.slane %v568_v41, 2  ;;  %v574_v2 = vrot.slane %v573_v42, 4  ;;  %v545_v33 = vadd.f32 %v1216_v43, %v1212_v1 }
 0x1c0   :  { %v1220_v40 = vpop.eup %895  ;;  %907 = vpow2.f32 %v534_v44 }
 0x1c1   :  { %v1222_v45 = vpop.eup %897  ;;  %v544_v46 = vadd.f32 %v543_v23, %v542_v24  ;;  %v570_v47 = vadd.f32 %v569_v29, %v568_v41  ;;  %v575_v50 = vadd.f32 %v574_v2, %v573_v42  ;;  %v546_v51 = vrot.slane %v545_v33, 4 }
 0x1c2   :  { %v552_v52 = vadd.f32 %v1222_v45, %v1220_v40  ;;  %909 = vpow2.f32 %v536_v25 }
 0x1c3   :  { %911 = vrcp.f32 %v544_v46  ;;  %v571_v53 = vrot.slane %v570_v47, 1  ;;  %v576_v55 = vrot.slane %v575_v50, 2  ;;  %v547_v57 = vadd.f32 %v546_v51, %v545_v33 }
 0x1c4   :  { %v553_v35 = vrot.slane %v552_v52, 4 }
 0x1c5   :  { %v1226_v39 = vpop.eup %899  ;;  %v572_v59 = vadd.f32 %v571_v53, %v570_v47  ;;  %v577_v60 = vadd.f32 %v576_v55, %v575_v50  ;;  %v548_v61 = vrot.slane %v547_v57, 2 }
 0x1c6   :  { %v1228_v62 = vpop.eup %901  ;;  %v554_v0 = vadd.f32 %v553_v35, %v552_v52 }
 0x1c7   :  { %913 = vrcp.f32 %v572_v59  ;;  %v578_v3 = vrot.slane %v577_v60, 1  ;;  %v549_v22 = vadd.f32 %v548_v61, %v547_v57  ;;  %v580_v49 = vadd.f32 %v1228_v62, %v1226_v39 }
 0x1c8   :  { %v555_v27 = vrot.slane %v554_v0, 2 }
 0x1c9   :  { %v1232_v48 = vpop.eup %903  ;;  %v579_v54 = vadd.f32 %v578_v3, %v577_v60  ;;  %v550_v28 = vrot.slane %v549_v22, 1  ;;  %v581_v63 = vrot.slane %v580_v49, 4 }
 0x1ca   :  { %v1234_v20 = vpop.eup %905  ;;  %v556_v30 = vadd.f32 %v555_v27, %v554_v0 }
 0x1cb   :  { %915 = vrcp.f32 %v579_v54  ;;  %v551_v32 = vadd.f32 %v550_v28, %v549_v22  ;;  %v582_v34 = vadd.f32 %v581_v63, %v580_v49  ;;  %v559_v36 = vadd.f32 %v1234_v20, %v1232_v48 }
 0x1cc   :  { %v557_v37 = vrot.slane %v556_v30, 1 }
 0x1cd   :  { %v1238_v24 = vpop.eup %907  ;;  %917 = vrcp.f32 %v551_v32  ;;  %v583_v41 = vrot.slane %v582_v34, 2  ;;  %v560_v42 = vrot.slane %v559_v36, 4 }
 0x1ce   :  { %v558_v44 = vadd.f32 %v557_v37, %v556_v30 }
 0x1cf   :  { %v1240_v25 = vpop.eup %909  ;;  %v584_v23 = vadd.f32 %v583_v41, %v582_v34  ;;  %v561_v29 = vadd.f32 %v560_v42, %v559_v36 }
 0x1d0   :  { %v912_v2 = vpop.eup %911  ;;  %919 = vrcp.f32 %v558_v44  ;;  %v587_v33 = vadd.f32 %v1240_v25, %v1238_v24 }
 0x1d1   :  { %v602_v46 = vmul.f32 %v912_v2, %v1191_v56  ;;  %v603_v47 = vmul.f32 %v912_v2, %v1193_v58  ;;  %v585_v50 = vrot.slane %v584_v23, 1  ;;  %v562_v51 = vrot.slane %v561_v29, 2 }
 0x1d2   :  { %v588_v52 = vrot.slane %v587_v33, 4 }
 0x1d3   :  { %v618_v53 = vmul.f32 %v602_v46, %v1063_v4  ;;  %v619_v55 = vmul.f32 %v603_v47, %v1067_v6  ;;  %716 = vst.msk [vmem:[%s1375_s5] sm:$0xff] %vm715_vm1, %v602_v46  ;;  %717 = vst.msk [vmem:[%s1375_s5 + $0x8] sm:$0xff] %vm715_vm1, %v603_v47  ;;  %v586_v56 = vadd.f32 %v585_v50, %v584_v23 }
 0x1d4   :  { %v563_v57 = vadd.f32 %v562_v51, %v561_v29  ;;  %v914_v58 = vpop.eup %913  ;;  %v589_v35 = vadd.f32 %v588_v52, %v587_v33 }
 0x1d5   :  { %v634_v59 = vsel %vm81_vm0, %v618_v53, 0.0  ;;  %v635_v4 = vsel %vm81_vm0, %v619_v55, 0.0  ;;  %v610_v6 = vmul.f32 %v914_v58, %v1199_v21  ;;  %v611_v60 = vmul.f32 %v914_v58, %v1201_v26 }
 0x1d6   :  { %v636_v61 = vadd.f32 %v635_v4, %v634_v59  ;;  %921 = vrcp.f32 %v586_v56  ;;  %v564_v0 = vrot.slane %v563_v57, 1  ;;  %v590_v3 = vrot.slane %v589_v35, 2 }
 0x1d7   :  { %v626_v22 = vmul.f32 %v610_v6, %v1065_v5  ;;  %v627_v49 = vmul.f32 %v611_v60, %v1069_v7  ;;  %724 = vst.msk [vmem:[%s1375_s5 + $0x40] sm:$0xff] %vm715_vm1, %v610_v6  ;;  %725 = vst.msk [vmem:[%s1375_s5 + $0x48] sm:$0xff] %vm715_vm1, %v611_v60 }
 0x1d8   :  { %v916_v21 = vpop.eup %915  ;;  %v637_v26 = vrot.slane %v636_v61, 4  ;;  %v565_v27 = vadd.f32 %v564_v0, %v563_v57  ;;  %v591_v54 = vadd.f32 %v590_v3, %v589_v35 }
 0x1d9   :  { %v670_v28 = vsel %vm81_vm0, %v626_v22, 0.0  ;;  %v671_v5 = vsel %vm81_vm0, %v627_v49, 0.0  ;;  %v612_v7 = vmul.f32 %v916_v21, %v1207_v31  ;;  %v613_v63 = vmul.f32 %v916_v21, %v1210_v38 }
 0x1da   :  { %v918_v30 = vpop.eup %917  ;;  %v638_v32 = vadd.f32 %v637_v26, %v636_v61  ;;  %v672_v34 = vadd.f32 %v671_v5, %v670_v28  ;;  %923 = vrcp.f32 %v565_v27  ;;  %v592_v36 = vrot.slane %v591_v54, 1 }
 0x1db   :  { %v628_v37 = vmul.f32 %v612_v7, %v1073_v9  ;;  %v629_v41 = vmul.f32 %v613_v63, %v1089_v11  ;;  %726 = vst.msk [vmem:[%s1375_s5 + $0x50] sm:$0xff] %vm715_vm1, %v612_v7  ;;  %727 = vst.msk [vmem:[%s1375_s5 + $0x58] sm:$0xff] %vm715_vm1, %v613_v63  ;;  %v604_v31 = vmul.f32 %v918_v30, %v1212_v1 }
 0x1dc   :  { %v605_v38 = vmul.f32 %v918_v30, %v1216_v43  ;;  %v639_v42 = vrot.slane %v638_v32, 2  ;;  %v673_v44 = vrot.slane %v672_v34, 4  ;;  %v593_v23 = vadd.f32 %v592_v36, %v591_v54 }
 0x1dd   :  { %v920_v9 = vpop.eup %919  ;;  %v679_v11 = vsel %vm81_vm0, %v628_v37, 0.0  ;;  %v680_v29 = vsel %vm81_vm0, %v629_v41, 0.0  ;;  %v620_v2 = vmul.f32 %v604_v31, %v1071_v8  ;;  %718 = vst.msk [vmem:[%s1375_s5 + $0x10] sm:$0xff] %vm715_vm1, %v604_v31 }
 0x1de   :  { %v621_v33 = vmul.f32 %v605_v38, %v1085_v10  ;;  %719 = vst.msk [vmem:[%s1375_s5 + $0x18] sm:$0xff] %vm715_vm1, %v605_v38  ;;  %v640_v1 = vadd.f32 %v639_v42, %v638_v32  ;;  %v674_v43 = vadd.f32 %v673_v44, %v672_v34  ;;  %v681_v46 = vadd.f32 %v680_v29, %v679_v11 }
 0x1df   :  { %v606_v47 = vmul.f32 %v920_v9, %v1220_v40  ;;  %v643_v50 = vsel %vm81_vm0, %v620_v2, 0.0  ;;  %v607_v10 = vmul.f32 %v920_v9, %v1222_v45  ;;  %925 = vrcp.f32 %v593_v23 }
 0x1e0   :  { %v644_v8 = vsel %vm81_vm0, %v621_v33, 0.0  ;;  %v641_v51 = vrot.slane %v640_v1, 1  ;;  %v675_v52 = vrot.slane %v674_v43, 2  ;;  %v682_v53 = vrot.slane %v681_v46, 4 }
 0x1e1   :  { %v645_v55 = vadd.f32 %v644_v8, %v643_v50  ;;  %720 = vst.msk [vmem:[%s1375_s5 + $0x20] sm:$0xff] %vm715_vm1, %v606_v47  ;;  %v622_v56 = vmul.f32 %v606_v47, %v1091_v12  ;;  %v623_v40 = vmul.f32 %v607_v10, %v1101_v14  ;;  %721 = vst.msk [vmem:[%s1375_s5 + $0x28] sm:$0xff] %vm715_vm1, %v607_v10 }
 0x1e2   :  { %v642_v45 = vadd.f32 %v641_v51, %v640_v1  ;;  %v676_v57 = vadd.f32 %v675_v52, %v674_v43  ;;  %v683_v58 = vadd.f32 %v682_v53, %v681_v46 }
 0x1e3   :  { %v646_v35 = vrot.slane %v645_v55, 4  ;;  %v922_v59 = vpop.eup %921  ;;  %v652_v4 = vsel %vm81_vm0, %v622_v56, 0.0  ;;  %v653_v6 = vsel %vm81_vm0, %v623_v40, 0.0 }
 0x1e4   :  { %v677_v60 = vrot.slane %v676_v57, 1  ;;  %v684_v61 = vrot.slane %v683_v58, 2  ;;  %v654_v0 = vadd.f32 %v653_v6, %v652_v4  ;;  %707 = vst.msk [vmem:[#allocation8] sm:$0x1] %vm706_vm2, %v642_v45  ;;  %v614_v14 = vmul.f32 %v922_v59, %v1226_v39 }
 0x1e5   :  { %v647_v12 = vadd.f32 %v646_v35, %v645_v55  ;;  %v615_v3 = vmul.f32 %v922_v59, %v1228_v62 }
 0x1e6   :  { %v678_v22 = vadd.f32 %v677_v60, %v676_v57  ;;  %v685_v49 = vadd.f32 %v684_v61, %v683_v58  ;;  %v655_v26 = vrot.slane %v654_v0, 4  ;;  %v630_v54 = vmul.f32 %v614_v14, %v1093_v13  ;;  %728 = vst.msk [vmem:[%s1375_s5 + $0x60] sm:$0xff] %vm715_vm1, %v614_v14 }
 0x1e7   :  { %v648_v21 = vrot.slane %v647_v12, 2  ;;  %v924_v27 = vpop.eup %923  ;;  %v631_v28 = vmul.f32 %v615_v3, %v1105_v15  ;;  %729 = vst.msk [vmem:[%s1375_s5 + $0x68] sm:$0xff] %vm715_vm1, %v615_v3 }
 0x1e8   :  { %v686_v39 = vrot.slane %v685_v49, 1  ;;  %v656_v5 = vadd.f32 %v655_v26, %v654_v0  ;;  %v608_v7 = vmul.f32 %v924_v27, %v1232_v48  ;;  %711 = vst.msk [vmem:[#allocation8 + $0x4] sm:$0x1] %vm706_vm2, %v678_v22  ;;  %v688_v13 = vsel %vm81_vm0, %v630_v54, 0.0 }
 0x1e9   :  { %v649_v62 = vadd.f32 %v648_v21, %v647_v12  ;;  %v689_v15 = vsel %vm81_vm0, %v631_v28, 0.0  ;;  %v609_v63 = vmul.f32 %v924_v27, %v1234_v20 }
 0x1ea   :  { %v687_v30 = vadd.f32 %v686_v39, %v685_v49  ;;  %v657_v34 = vrot.slane %v656_v5, 2  ;;  %v690_v36 = vadd.f32 %v689_v15, %v688_v13  ;;  %722 = vst.msk [vmem:[%s1375_s5 + $0x30] sm:$0xff] %vm715_vm1, %v608_v7  ;;  %v624_v37 = vmul.f32 %v608_v7, %v1107_v16 }
 0x1eb   :  { %v650_v32 = vrot.slane %v649_v62, 1  ;;  %v625_v48 = vmul.f32 %v609_v63, %v1117_v18  ;;  %723 = vst.msk [vmem:[%s1375_s5 + $0x38] sm:$0xff] %vm715_vm1, %v609_v63 }
 0x1ec   :  { %v926_v41 = vpop.eup %925  ;;  %v658_v31 = vadd.f32 %v657_v34, %v656_v5  ;;  %v691_v38 = vrot.slane %v690_v36, 4  ;;  %712 = vst.msk [vmem:[#allocation8 + $0x5] sm:$0x1] %vm706_vm2, %v687_v30  ;;  %v661_v42 = vsel %vm81_vm0, %v624_v37, 0.0 }
 0x1ed   :  { %v651_v20 = vadd.f32 %v650_v32, %v649_v62  ;;  %v662_v44 = vsel %vm81_vm0, %v625_v48, 0.0  ;;  %v616_v23 = vmul.f32 %v926_v41, %v1238_v24  ;;  %v617_v16 = vmul.f32 %v926_v41, %v1240_v25 }
 0x1ee   :  { %v659_v18 = vrot.slane %v658_v31, 1  ;;  %v692_v9 = vadd.f32 %v691_v38, %v690_v36  ;;  %v663_v11 = vadd.f32 %v662_v44, %v661_v42 }
 0x1ef   :  { %708 = vst.msk [vmem:[#allocation8 + $0x1] sm:$0x1] %vm706_vm2, %v651_v20  ;;  %v632_v29 = vmul.f32 %v616_v23, %v1109_v17  ;;  %v633_v2 = vmul.f32 %v617_v16, %v1121_v19 }
 0x1f0   :  { %730 = vst.msk [vmem:[%s1375_s5 + $0x70] sm:$0xff] %vm715_vm1, %v616_v23  ;;  %731 = vst.msk [vmem:[%s1375_s5 + $0x78] sm:$0xff] %vm715_vm1, %v617_v16  ;;  %v660_v24 = vadd.f32 %v659_v18, %v658_v31  ;;  %v693_v25 = vrot.slane %v692_v9, 2  ;;  %v664_v33 = vrot.slane %v663_v11, 4  ;;  %s1020_s5 = smov [#allocation8]  }
 0x1f1   :  { %v697_v1 = vsel %vm81_vm0, %v632_v29, 0.0  ;;  %v698_v43 = vsel %vm81_vm0, %v633_v2, 0.0  ;;  %s737_s15 = sshll.u32 %s1020_s5, 4  ;;  %s738_s15 = int_to_ptr.vmem [resolvable:$true] %s737_s15 }
 0x1f2   :  { %v694_v17 = vadd.f32 %v693_v25, %v692_v9  ;;  %v665_v46 = vadd.f32 %v664_v33, %v663_v11  ;;  %v699_v19 = vadd.f32 %v698_v43, %v697_v1  ;;  %709 = vst.msk [vmem:[#allocation8 + $0x2] sm:$0x1] %vm706_vm2, %v660_v24  ;;  %s987_s16 = scalar_lea.vmem %s738_s15, 128  ;;  %p992_p2 = scmp.lt.s32.totalorder %s738_s15, %s738_s15 }
 0x1f3   :  { %p988_p1 = scmp.ne.s32.totalorder %s738_s15, %s987_s16  ;;  %p993_p3 = scmp.lt.s32.totalorder %s987_s16, %s987_s16 }
 0x1f4   :  { %v695_v47 = vrot.slane %v694_v17, 1  ;;  %v666_v50 = vrot.slane %v665_v46, 2  ;;  %v700_v8 = vrot.slane %v699_v19, 4 }
 0x1f5   :  { %p994_p4 = por %p993_p3, %p992_p2 }
 0x1f6   :  { %v696_v10 = vadd.f32 %v695_v47, %v694_v17  ;;  %v667_v51 = vadd.f32 %v666_v50, %v665_v46  ;;  %v701_v52 = vadd.f32 %v700_v8, %v699_v19 }
 0x1f7   :  { %p995_p5 = pnand %p994_p4, %p988_p1 }
 0x1f8   :  { %v668_v53 = vrot.slane %v667_v51, 1  ;;  %v702_v55 = vrot.slane %v701_v52, 2  ;;  %713 = vst.msk [vmem:[#allocation8 + $0x6] sm:$0x1] %vm706_vm2, %v696_v10 }
 0x1fa   :  { %v669_v56 = vadd.f32 %v668_v53, %v667_v51  ;;  %v703_v40 = vadd.f32 %v702_v55, %v701_v52 }
 0x1fc   :  { %v704_v45 = vrot.slane %v703_v40, 1  ;;  %710 = vst.msk [vmem:[#allocation8 + $0x3] sm:$0x1] %vm706_vm2, %v669_v56 }
 0x1fe   :  { %v705_v57 = vadd.f32 %v704_v45, %v703_v40 }
 0x200   :  { %714 = vst.msk [vmem:[#allocation8 + $0x7] sm:$0x1] %vm706_vm2, %v705_v57 }
 0x201   :  { %998 = shalt.err (!%p995_p5)
}
 0x202   :  { %743 = dma.vmem_to_hbm [thread:$0]  %s738_s15, 128, %s1374_s4, [#allocation4], %s1014_s21, %s1014_s21, %s1015_s22  }
 0x203   :  { %1011 = dma.done.wait [#allocation4], 128  }
 0x204   :  { %1012 = vsyncadd [#allocation4], 4294967168 }
 0x205   :  { %751 = vsyncpa [#allocation3], 1 }
 0x206   :  { %752 = vsyncpa [#allocation6], 1 }
 0x207   :  { %753 = vsyncpa [#allocation4], 1 }

</bundles_post_ra>
